<compile_context>
chip_gen: v5e
topology: v5e:2x2
jax: 0.10.0
libtpu: 0.0.40
codegen_flags: <defaults>
</compile_context>

<pallas_src>
import math
import functools

import jax
import jax.numpy as jnp
from jax.experimental import pallas as pl
from jax.experimental.pallas import tpu as pltpu

NEG_INF = -1e30


def _round_up(x, m):
    return ((x + m - 1) // m) * m


def _select_tiles(Lq, Lk, C, Ck, d_pad, batch):
    """VMEM-aware tile selection; always (8,128)-friendly, never full-dim blowups."""
    # Larger caps when the model dim is small (v5e/v6e have 128 MiB VMEM);
    # tighter when d_pad is big, which keeps v7x (64 MiB physical) comfortable.
    lq_cap, lk_cap = (512, 1024) if d_pad <= 256 else (256, 512)
    lq_tile = min(lq_cap, _round_up(Lq, 8))
    lk_tile = min(lk_cap, _round_up(Lk, 8))
    # Keep both v7x TensorCores fed: B * n_lq >= 2 when possible.
    if batch == 1:
        lq_tile = min(lq_tile, max(8, _round_up((Lq + 1) // 2, 8)))

    def footprint(lqt, lkt):
        f32, bf16 = 4, 2
        scr = lqt * d_pad * (f32 + bf16)                   # acc_sc (f32) + q_sc (bf16)
        scr += lkt * 2 * d_pad * bf16                      # one K|V tile
        io = 2 * (lqt * C + lkt * Ck + lqt * d_pad) * f32  # double-buffered blocks
        io += (C + 2 * Ck) * d_pad * bf16 * 2              # weight blocks
        tmp = 2 * lqt * lkt * f32                          # s / p temporaries
        return scr + io + tmp

    budget = 20 * 1024 * 1024
    while footprint(lq_tile, lk_tile) > budget and (lq_tile > 128 or lk_tile > 256):
        if lk_tile > 256:
            lk_tile = max(256, _round_up(lk_tile // 2, 8))
        else:
            lq_tile = max(128, _round_up(lq_tile // 2, 8))
    return lq_tile, lk_tile, footprint(lq_tile, lk_tile)


def _attn_kernel(lengths_ref,               # scalar-prefetch (SMEM): (B,) int32
                 q_ref, mem_ref,            # (1, lq_t, C) f32, (1, lk_t, Ck) f32
                 wq_ref, wkv_ref,           # (C, D_pad) bf16, (Ck, 2*D_pad) bf16
                 o_ref,                     # (1, lq_t, D_pad) f32
                 q_sc, kv_sc, m_sc, l_sc, acc_sc,
                 *, d_pad, lk_tile, cache_kv):
    b = pl.program_id(0)
    i = pl.program_id(1)
    k_idx = pl.program_id(2)
    n_k = pl.num_programs(2)
    valid_len = lengths_ref[b]
    tile_start = k_idx * lk_tile

    # --- init per (b, lq-tile): project Q once (1/sqrt(d_model) folded into wq).
    @pl.when(k_idx == 0)
    def _():
        q = q_ref[0].astype(jnp.bfloat16)                       # (lq_t, C) bf16
        q_sc[...] = jnp.dot(q, wq_ref[...],
                            preferred_element_type=jnp.float32).astype(jnp.bfloat16)
        m_sc[...] = jnp.full_like(m_sc, NEG_INF)
        l_sc[...] = jnp.zeros_like(l_sc)
        acc_sc[...] = jnp.zeros_like(acc_sc)

    def _project_kv():
        # Zero key rows at/after valid_len: masks padding AND neutralizes garbage
        # read from a ragged Lk tail block (valid_len <= Lk), so no NaN can leak
        # into V.  The (lk_tile, Ck) where is tiny (Ck is small).
        row = jax.lax.broadcasted_iota(jnp.int32, (lk_tile, 1), 0)
        mem = jnp.where(row < valid_len - tile_start, mem_ref[0], 0.0)
        return jnp.dot(mem.astype(jnp.bfloat16), wkv_ref[...],
                       preferred_element_type=jnp.float32).astype(jnp.bfloat16)

    # --- skip fully padded key tiles entirely (scalar predicate is free).
    @pl.when(tile_start < valid_len)
    def _():
        if cache_kv:
            # Project K|V only on the first lq tile of this batch; reuse after.
            # (The memory block is still DMA'd by the pipeline for i>0, but it is
            #  small: lk_tile x Ck; the redundant MXU projection is what we drop.)
            @pl.when(i == 0)
            def _():
                kv_sc[k_idx] = _project_kv()
            kv = kv_sc[k_idx]                                   # (lk_t, 2*D_pad) bf16
        else:
            kv = _project_kv()
        K = kv[:, :d_pad]
        V = kv[:, d_pad:]                                       # = mem @ (wv @ wo), padded

        # scores: contract last dims (no K transpose); bf16 operands, f32 accum.
        s = jax.lax.dot_general(q_sc[...], K, (((1,), (1,)), ((), ())),
                                preferred_element_type=jnp.float32)  # (lq_t, lk_t)

        # key padding mask from a (1, lk_tile) iota, broadcast over query rows.
        col = jax.lax.broadcasted_iota(jnp.int32, (1, lk_tile), 1)
        s = jnp.where(col < valid_len - tile_start, s, NEG_INF)

        # --- online (flash-style) softmax update (f32 statistics).
        m_prev = m_sc[...]
        m_new = jnp.maximum(m_prev, jnp.max(s, axis=-1, keepdims=True))
        p = jnp.exp(s - m_new)                    # masked cols -> exp(-huge) == 0
        alpha = jnp.exp(m_prev - m_new)           # (lq_t, 1)
        l_sc[...] = alpha * l_sc[...] + jnp.sum(p, axis=-1, keepdims=True)
        acc_sc[...] = alpha * acc_sc[...] + jnp.dot(p.astype(jnp.bfloat16), V,
                                                    preferred_element_type=jnp.float32)
        m_sc[...] = m_new

    # --- finalize: normalize and store once per (b, lq-tile), lane-dense.
    @pl.when(k_idx == n_k - 1)
    def _():
        # TODO(synk): lengths[b] == 0 yields zeros here, whereas the reference's
        # -1e30-masked softmax returns a uniform average of V; never exercised.
        inv_l = pl.reciprocal(jnp.maximum(l_sc[...], 1e-30), approx=True)
        o_ref[0] = (acc_sc[...] * inv_l).astype(o_ref.dtype)


def source_target_attention(query_nchw, memory, lengths, params, d_model):
    """query_nchw: (B, C, H, W); memory: (B, Lk, Ck); lengths: (B,) int."""
    B, C, H, W = query_nchw.shape
    Lq = H * W
    _, Lk, Ck = memory.shape

    # Lane-dense padded model dim (zeros in the pad are mathematically inert).
    d_pad = max(128, _round_up(d_model, 128))
    pad = d_pad - d_model
    scale = 1.0 / math.sqrt(d_model)

    wq, wk, wv, wo = params["wq"], params["wk"], params["wv"], params["wo"]
    wvo = wv @ wo                                            # fold output projection into V
    wq_p = jnp.pad(wq * scale, ((0, 0), (0, pad))).astype(jnp.bfloat16)   # scale folded in
    wkv = jnp.concatenate([jnp.pad(wk, ((0, 0), (0, pad))),
                           jnp.pad(wvo, ((0, 0), (0, pad)))],
                          axis=1).astype(jnp.bfloat16)       # (Ck, 2*D_pad)

    # NCHW -> (B, Lq, C) sequence layout.
    q_seq = jnp.transpose(query_nchw.reshape(B, C, Lq), (0, 2, 1))

    lq_tile, lk_tile, fp = _select_tiles(Lq, Lk, C, Ck, d_pad, B)
    n_lq = pl.cdiv(Lq, lq_tile)
    n_lk = pl.cdiv(Lk, lk_tile)

    # K|V VMEM cache across lq tiles (removes (n_lq-1) redundant projections).
    cache_bytes = n_lk * lk_tile * 2 * d_pad * 2             # bf16
    cache_kv = (cache_bytes <= 8 * 1024 * 1024) and (fp + cache_bytes <= 24 * 1024 * 1024)
    kv_slots = n_lk if cache_kv else 1

    kernel = functools.partial(_attn_kernel, d_pad=d_pad, lk_tile=lk_tile,
                               cache_kv=cache_kv)

    out_pad = pl.pallas_call(
        kernel,
        out_shape=jax.ShapeDtypeStruct((B, Lq, d_pad), jnp.float32),
        grid_spec=pltpu.PrefetchScalarGridSpec(
            num_scalar_prefetch=1,
            grid=(B, n_lq, n_lk),
            in_specs=[
                pl.BlockSpec((1, lq_tile, C), lambda b, i, k, lens: (b, i, 0)),
                pl.BlockSpec((1, lk_tile, Ck), lambda b, i, k, lens: (b, k, 0)),
                pl.BlockSpec((C, d_pad), lambda b, i, k, lens: (0, 0)),
                pl.BlockSpec((Ck, 2 * d_pad), lambda b, i, k, lens: (0, 0)),
            ],
            out_specs=pl.BlockSpec((1, lq_tile, d_pad),
                                   lambda b, i, k, lens: (b, i, 0)),
            scratch_shapes=[
                pltpu.VMEM((lq_tile, d_pad), jnp.bfloat16),              # scaled Q (bf16)
                pltpu.VMEM((kv_slots, lk_tile, 2 * d_pad), jnp.bfloat16),  # K|V cache
                pltpu.VMEM((lq_tile, 1), jnp.float32),                   # running max
                pltpu.VMEM((lq_tile, 1), jnp.float32),                   # running denom
                pltpu.VMEM((lq_tile, d_pad), jnp.float32),               # output accumulator
            ]),
        compiler_params=pltpu.CompilerParams(
            dimension_semantics=("parallel", "parallel", "arbitrary"),
            vmem_limit_bytes=32 * 1024 * 1024),
    )(lengths.astype(jnp.int32), q_seq, memory, wq_p, wkv)

    # Drop zero padding, (B, Lq, D) -> (B, D, H, W).
    out = out_pad[:, :, :d_model]
    return jnp.transpose(out, (0, 2, 1)).reshape(B, d_model, H, W)


def _reference(query_nchw, memory, lengths, params, d_model):
    """Pure-JAX f32 reference of the same forward pass (unpadded, unfused)."""
    B, C, H, W = query_nchw.shape
    Lq = H * W
    q_seq = jnp.transpose(query_nchw.reshape(B, C, Lq), (0, 2, 1))
    Q = q_seq @ params["wq"]
    K = memory @ params["wk"]
    V = memory @ params["wv"]
    scores = jnp.einsum("bqd,bkd->bqk", Q, K) / math.sqrt(d_model)
    Lk = memory.shape[1]
    mask = jnp.arange(Lk)[None, :] >= lengths[:, None]           # (B, Lk) True=pad
    scores = jnp.where(mask[:, None, :], -1e30, scores)
    p = jax.nn.softmax(scores, axis=-1)
    out = jnp.einsum("bqk,bkd->bqd", p, V) @ params["wo"]
    return jnp.transpose(out, (0, 2, 1)).reshape(B, d_model, H, W)


if __name__ == "__main__":
    # Small, module-consistent shapes.
    B, C, H, W = 2, 4, 4, 4          # query: NCHW
    Lk, key_dim = 8, 8               # memory: (B, Lk, key_dim) == value source
    d_model = 32                     # nhead=1, bias=False

    key = jax.random.PRNGKey(0)
    k_q, k_m, k_wq, k_wk, k_wv, k_wo = jax.random.split(key, 6)

    query = jax.random.normal(k_q, (B, C, H, W), dtype=jnp.float32)
    memory = jax.random.normal(k_m, (B, Lk, key_dim), dtype=jnp.float32)
    lengths = jnp.array([8, 5], dtype=jnp.int32)

    # Deterministic synthetic weights (stored as (in, out); bias=False).
    # TODO(synk): exact MultiHeadAttention internals (e.g. spectral-norm option)
    # are not given in the snippet; standard single-head projections + output
    # linear are implemented here.
    params = {
        "wq": jax.random.normal(k_wq, (C, d_model), dtype=jnp.float32) * 0.1,
        "wk": jax.random.normal(k_wk, (key_dim, d_model), dtype=jnp.float32) * 0.1,
        "wv": jax.random.normal(k_wv, (key_dim, d_model), dtype=jnp.float32) * 0.1,
        "wo": jax.random.normal(k_wo, (d_model, d_model), dtype=jnp.float32) * 0.1,
    }

    out = source_target_attention(query, memory, lengths, params, d_model)
    out = jax.block_until_ready(out)
    assert out.shape == (B, d_model, H, W), out.shape

    ref = jax.block_until_ready(_reference(query, memory, lengths, params, d_model))
    # bf16 MXU operands + wo-fold reassociation + approx reciprocal => bf16-level tolerance.
    assert jnp.allclose(out, ref, atol=2e-2, rtol=2e-2), "mismatch vs reference"

    print("KERNEL_OK")
</pallas_src>

<mosaic_0001>
module attributes {stable_mosaic.version = 11 : i64} {
  func.func @_attn_kernel(%arg0: i32, %arg1: i32, %arg2: i32, %arg3: memref<2xi32, #tpu.memory_space<smem>>, %arg4: memref<1x16x4xf32, #tpu.memory_space<vmem>>, %arg5: memref<1x8x8xf32, #tpu.memory_space<vmem>>, %arg6: memref<4x128xbf16, #tpu.memory_space<vmem>>, %arg7: memref<8x256xbf16, #tpu.memory_space<vmem>>, %arg8: memref<1x16x128xf32, #tpu.memory_space<vmem>>, %arg9: memref<16x128xbf16, #tpu.memory_space<vmem>>, %arg10: memref<1x8x256xbf16, #tpu.memory_space<vmem>>, %arg11: memref<16x1xf32, #tpu.memory_space<vmem>>, %arg12: memref<16x1xf32, #tpu.memory_space<vmem>>, %arg13: memref<16x128xf32, #tpu.memory_space<vmem>>) attributes {dimension_semantics = [#tpu.dimension_semantics<parallel>, #tpu.dimension_semantics<parallel>, #tpu.dimension_semantics<arbitrary>], iteration_bounds = array<i64: 2, 1, 1>, scalar_prefetch = 1 : i64, scratch_operands = 5 : i64, tpu.core_type = #tpu.core_type<tc>, window_params = [{transform_indices = @transform_0, window_bounds = array<i64: 1, 16, 4>}, {transform_indices = @transform_1, window_bounds = array<i64: 1, 8, 8>}, {pipeline_mode = #tpu.pipeline_mode<synchronous>, transform_indices = @transform_2, window_bounds = array<i64: 4, 128>}, {pipeline_mode = #tpu.pipeline_mode<synchronous>, transform_indices = @transform_3, window_bounds = array<i64: 8, 256>}, {transform_indices = @transform_4, window_bounds = array<i64: 1, 16, 128>}]} {
    %0 = arith.index_cast %arg0 : i32 to index
    %1 = memref.load %arg3[%0] : memref<2xi32, #tpu.memory_space<smem>>
    %c8_i32 = arith.constant 8 : i32
    %2 = arith.muli %arg2, %c8_i32 : i32
    %c0_i32 = arith.constant 0 : i32
    %3 = arith.cmpi eq, %arg2, %c0_i32 : i32
    %4 = arith.extui %3 : i1 to i32
    %c0_i32_0 = arith.constant 0 : i32
    %5 = arith.cmpi ne, %4, %c0_i32_0 : i32
    scf.if %5 {
      %c0 = arith.constant 0 : index
      %c0_4 = arith.constant 0 : index
      %c0_5 = arith.constant 0 : index
      %12 = vector.load %arg4[%c0, %c0_4, %c0_5] : memref<1x16x4xf32, #tpu.memory_space<vmem>>, vector<1x16x4xf32>
      %13 = vector.shape_cast %12 : vector<1x16x4xf32> to vector<16x4xf32>
      %14 = arith.truncf %13 : vector<16x4xf32> to vector<16x4xbf16>
      %c0_6 = arith.constant 0 : index
      %c0_7 = arith.constant 0 : index
      %15 = vector.load %arg6[%c0_6, %c0_7] : memref<4x128xbf16, #tpu.memory_space<vmem>>, vector<4x128xbf16>
      %cst = arith.constant dense<0.000000e+00> : vector<16x128xf32>
      %16 = tpu.matmul %14, %15, %cst {dimension_numbers = #tpu.dot_dimension_numbers<[1], [0], [0], [1], [0, 0, 1, 1], [], []>} : vector<16x4xbf16>, vector<4x128xbf16>, vector<16x128xf32> -> vector<16x128xf32>
      %17 = arith.truncf %16 : vector<16x128xf32> to vector<16x128xbf16>
      %c0_8 = arith.constant 0 : index
      %c0_9 = arith.constant 0 : index
      %18 = vector.load %arg9[%c0_8, %c0_9] : memref<16x128xbf16, #tpu.memory_space<vmem>>, vector<16x128xbf16>
      tpu.vector_store %arg9[%c0_8, %c0_9], %17 {strides = array<i32>} : memref<16x128xbf16, #tpu.memory_space<vmem>>, vector<16x128xbf16>,
      %cst_10 = arith.constant -1.000000e+30 : f32
      %19 = vector.broadcast %cst_10 : f32 to vector<16x1xf32>
      %c0_11 = arith.constant 0 : index
      %c0_12 = arith.constant 0 : index
      %20 = vector.load %arg11[%c0_11, %c0_12] : memref<16x1xf32, #tpu.memory_space<vmem>>, vector<16x1xf32>
      tpu.vector_store %arg11[%c0_11, %c0_12], %19 {strides = array<i32>} : memref<16x1xf32, #tpu.memory_space<vmem>>, vector<16x1xf32>,
      %cst_13 = arith.constant 0.000000e+00 : f32
      %21 = vector.broadcast %cst_13 : f32 to vector<16x1xf32>
      %c0_14 = arith.constant 0 : index
      %c0_15 = arith.constant 0 : index
      %22 = vector.load %arg12[%c0_14, %c0_15] : memref<16x1xf32, #tpu.memory_space<vmem>>, vector<16x1xf32>
      tpu.vector_store %arg12[%c0_14, %c0_15], %21 {strides = array<i32>} : memref<16x1xf32, #tpu.memory_space<vmem>>, vector<16x1xf32>,
      %cst_16 = arith.constant 0.000000e+00 : f32
      %23 = vector.broadcast %cst_16 : f32 to vector<16x128xf32>
      %c0_17 = arith.constant 0 : index
      %c0_18 = arith.constant 0 : index
      %24 = vector.load %arg13[%c0_17, %c0_18] : memref<16x128xf32, #tpu.memory_space<vmem>>, vector<16x128xf32>
      tpu.vector_store %arg13[%c0_17, %c0_18], %23 {strides = array<i32>} : memref<16x128xf32, #tpu.memory_space<vmem>>, vector<16x128xf32>,
    } else {
    }
    %6 = arith.cmpi slt, %2, %1 : i32
    %7 = arith.extui %6 : i1 to i32
    %c0_i32_1 = arith.constant 0 : i32
    %8 = arith.cmpi ne, %7, %c0_i32_1 : i32
    scf.if %8 {
      %c0_i32_4 = arith.constant 0 : i32
      %12 = arith.cmpi eq, %arg1, %c0_i32_4 : i32
      %13 = arith.extui %12 : i1 to i32
      %c0_i32_5 = arith.constant 0 : i32
      %14 = arith.cmpi ne, %13, %c0_i32_5 : i32
      scf.if %14 {
        %53 = tpu.iota {dimensions = array<i32: 0>} : vector<8x1xi32>
        %54 = arith.subi %1, %2 : i32
        %55 = vector.broadcast %54 : i32 to vector<8x1xi32>
        %56 = arith.cmpi slt, %53, %55 : vector<8x1xi32>
        %c0_25 = arith.constant 0 : index
        %c0_26 = arith.constant 0 : index
        %c0_27 = arith.constant 0 : index
        %57 = vector.load %arg5[%c0_25, %c0_26, %c0_27] : memref<1x8x8xf32, #tpu.memory_space<vmem>>, vector<1x8x8xf32>
        %58 = vector.shape_cast %57 : vector<1x8x8xf32> to vector<8x8xf32>
        %cst_28 = arith.constant 0.000000e+00 : f32
        %59 = vector.shape_cast %56 : vector<8x1xi1> to vector<8x1xi1>
        %60 = vector.broadcast %59 : vector<8x1xi1> to vector<8x8xi1>
        %61 = vector.broadcast %cst_28 : f32 to vector<8x8xf32>
        %62 = arith.select %60, %58, %61 : vector<8x8xi1>, vector<8x8xf32>
        %63 = arith.truncf %62 : vector<8x8xf32> to vector<8x8xbf16>
        %c0_29 = arith.constant 0 : index
        %c0_30 = arith.constant 0 : index
        %64 = vector.load %arg7[%c0_29, %c0_30] : memref<8x256xbf16, #tpu.memory_space<vmem>>, vector<8x256xbf16>
        %cst_31 = arith.constant dense<0.000000e+00> : vector<8x256xf32>
        %65 = tpu.matmul %63, %64, %cst_31 {dimension_numbers = #tpu.dot_dimension_numbers<[1], [0], [0], [1], [0, 0, 1, 1], [], []>} : vector<8x8xbf16>, vector<8x256xbf16>, vector<8x256xf32> -> vector<8x256xf32>
        %66 = arith.truncf %65 : vector<8x256xf32> to vector<8x256xbf16>
        %67 = arith.index_cast %arg2 : i32 to index
        %c0_32 = arith.constant 0 : index
        %c0_33 = arith.constant 0 : index
        %68 = vector.load %arg10[%67, %c0_32, %c0_33] : memref<1x8x256xbf16, #tpu.memory_space<vmem>>, vector<1x8x256xbf16>
        %69 = vector.shape_cast %68 : vector<1x8x256xbf16> to vector<8x256xbf16>
        %70 = vector.shape_cast %66 : vector<8x256xbf16> to vector<1x8x256xbf16>
        tpu.vector_store %arg10[%67, %c0_32, %c0_33], %70 {strides = array<i32>} : memref<1x8x256xbf16, #tpu.memory_space<vmem>>, vector<1x8x256xbf16>,
      } else {
      }
      %15 = arith.index_cast %arg2 : i32 to index
      %c0 = arith.constant 0 : index
      %c0_6 = arith.constant 0 : index
      %16 = vector.load %arg10[%15, %c0, %c0_6] : memref<1x8x256xbf16, #tpu.memory_space<vmem>>, vector<1x8x256xbf16>
      %17 = vector.shape_cast %16 : vector<1x8x256xbf16> to vector<8x256xbf16>
      %18 = vector.extract_strided_slice %17 {offsets = [0, 0], sizes = [8, 128], strides = [1, 1]} : vector<8x256xbf16> to vector<8x128xbf16>
      %19 = vector.extract_strided_slice %17 {offsets = [0, 128], sizes = [8, 128], strides = [1, 1]} : vector<8x256xbf16> to vector<8x128xbf16>
      %c0_7 = arith.constant 0 : index
      %c0_8 = arith.constant 0 : index
      %20 = vector.load %arg9[%c0_7, %c0_8] : memref<16x128xbf16, #tpu.memory_space<vmem>>, vector<16x128xbf16>
      %cst = arith.constant dense<0.000000e+00> : vector<16x8xf32>
      %21 = tpu.matmul %20, %18, %cst {dimension_numbers = #tpu.dot_dimension_numbers<[1], [1], [0], [0], [0, 0, 1, 0], [], []>} : vector<16x128xbf16>, vector<8x128xbf16>, vector<16x8xf32> -> vector<16x8xf32>
      %22 = tpu.iota {dimensions = array<i32: 1>} : vector<1x8xi32>
      %23 = arith.subi %1, %2 : i32
      %24 = vector.broadcast %23 : i32 to vector<1x8xi32>
      %25 = arith.cmpi slt, %22, %24 : vector<1x8xi32>
      %cst_9 = arith.constant -1.000000e+30 : f32
      %26 = vector.shape_cast %25 : vector<1x8xi1> to vector<1x8xi1>
      %27 = vector.broadcast %26 : vector<1x8xi1> to vector<16x8xi1>
      %28 = vector.broadcast %cst_9 : f32 to vector<16x8xf32>
      %29 = arith.select %27, %21, %28 : vector<16x8xi1>, vector<16x8xf32>
      %c0_10 = arith.constant 0 : index
      %c0_11 = arith.constant 0 : index
      %30 = vector.load %arg11[%c0_10, %c0_11] : memref<16x1xf32, #tpu.memory_space<vmem>>, vector<16x1xf32>
      %cst_12 = arith.constant dense<0xFF800000> : vector<16xf32>
      %31 = vector.multi_reduction <maximumf>, %29, %cst_12 [1] : vector<16x8xf32> to vector<16xf32>
      %32 = vector.shape_cast %31 : vector<16xf32> to vector<16x1xf32>
      %33 = arith.maximumf %30, %32 : vector<16x1xf32>
      %34 = vector.broadcast %33 : vector<16x1xf32> to vector<16x8xf32>
      %35 = arith.subf %29, %34 : vector<16x8xf32>
      %36 = math.exp %35 : vector<16x8xf32>
      %37 = arith.subf %30, %33 : vector<16x1xf32>
      %38 = math.exp %37 : vector<16x1xf32>
      %c0_13 = arith.constant 0 : index
      %c0_14 = arith.constant 0 : index
      %39 = vector.load %arg12[%c0_13, %c0_14] : memref<16x1xf32, #tpu.memory_space<vmem>>, vector<16x1xf32>
      %40 = arith.mulf %38, %39 : vector<16x1xf32>
      %cst_15 = arith.constant dense<0.000000e+00> : vector<16xf32>
      %41 = vector.multi_reduction <add>, %36, %cst_15 [1] : vector<16x8xf32> to vector<16xf32>
      %42 = vector.shape_cast %41 : vector<16xf32> to vector<16x1xf32>
      %43 = arith.addf %40, %42 : vector<16x1xf32>
      %c0_16 = arith.constant 0 : index
      %c0_17 = arith.constant 0 : index
      %44 = vector.load %arg12[%c0_16, %c0_17] : memref<16x1xf32, #tpu.memory_space<vmem>>, vector<16x1xf32>
      tpu.vector_store %arg12[%c0_16, %c0_17], %43 {strides = array<i32>} : memref<16x1xf32, #tpu.memory_space<vmem>>, vector<16x1xf32>,
      %c0_18 = arith.constant 0 : index
      %c0_19 = arith.constant 0 : index
      %45 = vector.load %arg13[%c0_18, %c0_19] : memref<16x128xf32, #tpu.memory_space<vmem>>, vector<16x128xf32>
      %46 = vector.broadcast %38 : vector<16x1xf32> to vector<16x128xf32>
      %47 = arith.mulf %46, %45 : vector<16x128xf32>
      %48 = arith.truncf %36 : vector<16x8xf32> to vector<16x8xbf16>
      %cst_20 = arith.constant dense<0.000000e+00> : vector<16x128xf32>
      %49 = tpu.matmul %48, %19, %cst_20 {dimension_numbers = #tpu.dot_dimension_numbers<[1], [0], [0], [1], [0, 0, 1, 1], [], []>} : vector<16x8xbf16>, vector<8x128xbf16>, vector<16x128xf32> -> vector<16x128xf32>
      %50 = arith.addf %47, %49 : vector<16x128xf32>
      %c0_21 = arith.constant 0 : index
      %c0_22 = arith.constant 0 : index
      %51 = vector.load %arg13[%c0_21, %c0_22] : memref<16x128xf32, #tpu.memory_space<vmem>>, vector<16x128xf32>
      tpu.vector_store %arg13[%c0_21, %c0_22], %50 {strides = array<i32>} : memref<16x128xf32, #tpu.memory_space<vmem>>, vector<16x128xf32>,
      %c0_23 = arith.constant 0 : index
      %c0_24 = arith.constant 0 : index
      %52 = vector.load %arg11[%c0_23, %c0_24] : memref<16x1xf32, #tpu.memory_space<vmem>>, vector<16x1xf32>
      tpu.vector_store %arg11[%c0_23, %c0_24], %33 {strides = array<i32>} : memref<16x1xf32, #tpu.memory_space<vmem>>, vector<16x1xf32>,
    } else {
    }
    %c0_i32_2 = arith.constant 0 : i32
    %9 = arith.cmpi eq, %arg2, %c0_i32_2 : i32
    %10 = arith.extui %9 : i1 to i32
    %c0_i32_3 = arith.constant 0 : i32
    %11 = arith.cmpi ne, %10, %c0_i32_3 : i32
    scf.if %11 {
      %c0 = arith.constant 0 : index
      %c0_4 = arith.constant 0 : index
      %12 = vector.load %arg12[%c0, %c0_4] : memref<16x1xf32, #tpu.memory_space<vmem>>, vector<16x1xf32>
      %cst = arith.constant 1.000000e-30 : f32
      %13 = vector.broadcast %cst : f32 to vector<16x1xf32>
      %14 = arith.maximumf %12, %13 : vector<16x1xf32>
      %15 = tpu.reciprocal %14 {approx = true} : vector<16x1xf32> -> vector<16x1xf32>
      %c0_5 = arith.constant 0 : index
      %c0_6 = arith.constant 0 : index
      %16 = vector.load %arg13[%c0_5, %c0_6] : memref<16x128xf32, #tpu.memory_space<vmem>>, vector<16x128xf32>
      %17 = vector.broadcast %15 : vector<16x1xf32> to vector<16x128xf32>
      %18 = arith.mulf %16, %17 : vector<16x128xf32>
      %c0_7 = arith.constant 0 : index
      %c0_8 = arith.constant 0 : index
      %c0_9 = arith.constant 0 : index
      %19 = vector.load %arg8[%c0_7, %c0_8, %c0_9] : memref<1x16x128xf32, #tpu.memory_space<vmem>>, vector<1x16x128xf32>
      %20 = vector.shape_cast %19 : vector<1x16x128xf32> to vector<16x128xf32>
      %21 = vector.shape_cast %18 : vector<16x128xf32> to vector<1x16x128xf32>
      tpu.vector_store %arg8[%c0_7, %c0_8, %c0_9], %21 {strides = array<i32>} : memref<1x16x128xf32, #tpu.memory_space<vmem>>, vector<1x16x128xf32>,
    } else {
    }
    return
  }
  func.func @transform_0(%arg0: i32, %arg1: i32, %arg2: i32, %arg3: memref<2xi32, #tpu.memory_space<smem>>) -> (i32, i32, i32) {
    %c0_i32 = arith.constant 0 : i32
    %c0_i32_0 = arith.constant 0 : i32
    return %arg0, %arg1, %c0_i32 : i32, i32, i32
  }
  func.func @transform_1(%arg0: i32, %arg1: i32, %arg2: i32, %arg3: memref<2xi32, #tpu.memory_space<smem>>) -> (i32, i32, i32) {
    %c0_i32 = arith.constant 0 : i32
    %c0_i32_0 = arith.constant 0 : i32
    return %arg0, %arg2, %c0_i32 : i32, i32, i32
  }
  func.func @transform_2(%arg0: i32, %arg1: i32, %arg2: i32, %arg3: memref<2xi32, #tpu.memory_space<smem>>) -> (i32, i32) {
    %c0_i32 = arith.constant 0 : i32
    %c0_i32_0 = arith.constant 0 : i32
    %c0_i32_1 = arith.constant 0 : i32
    return %c0_i32, %c0_i32_0 : i32, i32
  }
  func.func @transform_3(%arg0: i32, %arg1: i32, %arg2: i32, %arg3: memref<2xi32, #tpu.memory_space<smem>>) -> (i32, i32) {
    %c0_i32 = arith.constant 0 : i32
    %c0_i32_0 = arith.constant 0 : i32
    %c0_i32_1 = arith.constant 0 : i32
    return %c0_i32, %c0_i32_0 : i32, i32
  }
  func.func @transform_4(%arg0: i32, %arg1: i32, %arg2: i32, %arg3: memref<2xi32, #tpu.memory_space<smem>>) -> (i32, i32, i32) {
    %c0_i32 = arith.constant 0 : i32
    %c0_i32_0 = arith.constant 0 : i32
    return %arg0, %arg1, %c0_i32 : i32, i32, i32
  }
}

</mosaic_0001>

<bundles_post_ra>
// kernel: tpu_custom_call.1
= control target key start
LH: loop header
LB: loop body
LE: loop exit
PB: predicated region body
PF: predicated region fallthrough
CT: control target
= control target key end

     0   :  { %s857_s21 = smov [#allocation8]   ;;  %s1035_s0 = inlined_call_operand.vmem [shape: s32[2], index: 0, kind: input, shape index: {}]   ;;  %s1036_s1 = inlined_call_operand.vmem [shape: f32[2,16,4], index: 1, kind: input, shape index: {}]   ;;  %s1037_s2 = inlined_call_operand.vmem [shape: f32[2,8,8], index: 2, kind: input, shape index: {}]   ;;  %s1038_s3 = inlined_call_operand.vmem [shape: bf16[4,128], index: 3, kind: input, shape index: {}]   ;;  %s1039_s4 = inlined_call_operand.vmem [shape: bf16[8,256], index: 4, kind: input, shape index: {}]   ;;  %s1040_s5 = inlined_call_operand.hbm [shape: f32[2,16,128], index: 5, kind: output, shape index: {}]  }
   0x1   :  { %s11_s20 = sshll.u32 %s1035_s0, 4  ;;  %s12_s20 = int_to_ptr.vmem [resolvable:$true] %s11_s20 }
   0x2   :  { %14 = dma.vmem_to_smem %s12_s20, 16, %s857_s21, [#allocation7] }
   0x3   :  { %827 = dma.done.wait [#allocation7], 16 }
   0x4   :  { %828 = vsyncadd [#allocation7], 4294967280 }
   0x5   :  { %17 = sfence }
   0x6   :  { %18 = vsyncpa [#allocation10], 0 }
   0x7   :  { %20 = vsyncpa [#allocation10 + $0x1], 0  ;;  %s897_s22 = smov 0   ;;  %s899_s23 = smov 0  }
   0x8   :  { %s901_s24 = smov 0   ;;  %s903_s25 = smov 0  }
   0x9   :  { %s905_s26 = smov 0   ;;  %s907_s27 = smov 0  }
   0xa LB: > { %s653_s0 = sadd.s32 4294967295, %s855_s27   ;;  %s654_s28 = sadd.s32 4294967294, %s855_s27   ;;  %s855_s27 = sphi %s907_s27, %s26_s27   ;;  %s851_s26 = sphi %s905_s26, %s1047_s26   ;;  %s847_s25 = sphi %s903_s25, %s1046_s25   ;;  %s843_s24 = sphi %s901_s24, %s1045_s24   ;;  %s839_s23 = sphi %s899_s23, %s1044_s23   ;;  %s835_s22 = sphi %s897_s22, %s1043_s22  }
   0xb   : > { %s45_s29 = sadd.s32 1, %s851_s26  ;;  %s152_s30 = sadd.s32 1, %s843_s24 }
   0xc   : > { %p47_p0 = scmp.ge.s32.totalorder %s45_s29, 2  ;;  %p162_p1 = scmp.ne.s32.totalorder %s843_s24, %s839_s23 }
   0xd   : > { %p163_p2 = scmp.eq.s32.totalorder %s653_s0, 1  ;;  %p168_p3 = scmp.ne.s32.totalorder %s839_s23, %s835_s22 }
   0xe   : > { %s1049_s29 = smov (%p47_p0, %s45_s29), 0  ;;  %p169_p5 = scmp.eq.s32.totalorder %s654_s28, 1 }
   0xf   : > { %p937_p4 = por %p163_p2, %p162_p1  ;;  %s147_s7 = ssub.s32 %s851_s26, %s1049_s29 }
  0x10   : > { %p657_p6 = scmp.ge.s32.totalorder %s855_s27, 1  ;;  %p150_p7 = scmp.eq.s32.totalorder %s147_s7, 0 }
  0x11   : > { %p944_p8 = por %p169_p5, %p168_p3  ;;  %p216_p9 = scmp.lt.s32.totalorder %s855_s27, 3 }
  0x12   : > { %s950_s9 = scalar_select %p150_p7, %s843_s24, %s152_s30  }
  0x13   : > { %p217_p10 = pnand %p657_p6, %p216_p9 }
  0x14   : > { %s250_s10 = sand.u32 (!%p217_p10), 1, %s839_s23   ;;  %s954_s11 = sld [smem:[#allocation8 + %s847_s25]] (!%p217_p10) }
  0x15   : > { %220 = sbr.rel (%p217_p10) target bundleno = 984 (0x3d8), region = 36  ;;  %s658_s14 = sshll.u32 (!%p217_p10), %s250_s10, 4 }
  0x16   : > { %p254_p11 = scmp.lt.s32.totalorder (!%p217_p10), %s847_s25, 1  ;;  %s973_s30 = scalar_lea.vmem (!%p217_p10), [#allocation9], %s658_s14 }
  0x1a   : > { %v281_v0 = vld [vmem:[%s1038_s3] sm:$0x3]  ;;  %vm286_vm0 = vcmask 1041408   ;;  %s255_s15 = scalar_select %p254_p11, %s847_s25, 1  ;;  %vm282_vm1 = vcmask 31744   ;;  %vm308_vm2 = vcmask 7168  }
  0x1b   : > { %v288_v1 = vsel %vm286_vm0, %v281_v0, 0  ;;  %v858_v5 = vmov -1e+30   ;;  %v859_v6 = vmov 0.0   ;;  %p664_p12 = scmp.le.s32.totalorder %s954_s11, 0 }
  0x1c   : > { %297 = vmatpush.bf16.msra.mxu0 %v288_v1  ;;  %s677_s16 = sshll.u32 %s255_s15, 4  ;;  %s661_s17 = sshll.u32 %s255_s15, 3  ;;  %309 = vst.msk [vmem:[#allocation4] sm:$0xff] %vm308_vm2, %v858_v5 }
  0x1d   : > { %s261_s20 = scalar_lea.vmem %s1036_s1, %s677_s16  ;;  %s269_s28 = scalar_lea.vmem %s1037_s2, %s661_s17  ;;  %310 = vst.msk [vmem:[#allocation4 + $0x8] sm:$0xff] %vm308_vm2, %v858_v5 }
  0x1e   : > { %v278_v2 = vld [vmem:[%s261_s20] sm:$0xff]  ;;  %v279_v3 = vld [vmem:[%s261_s20 + $0x8] sm:$0xff]  ;;  %311 = vst.msk [vmem:[#allocation5] sm:$0xff] %vm308_vm2, %v859_v6 }
  0x1f   : > { %v280_v4 = vpack.c.bf16 %v279_v3, %v278_v2  ;;  %312 = vst.msk [vmem:[#allocation5 + $0x8] sm:$0xff] %vm308_vm2, %v859_v6 }
  0x20   : > { %313 = vst [vmem:[#allocation6] sm:$0xff] %v859_v6 }
  0x21   : > { %662 = vmatmul.msk.bf16.vlgmr.msra.gmra.mxu0 %vm282_vm1, %v280_v4  ;;  %314 = vst [vmem:[#allocation6 + $0x8] sm:$0xff] %v859_v6 }
  0x9e   : > { %v299_v7 = vpop.f32.mrf.mxu0 }
  0xa5   : > { %318 = sbr.rel (%p664_p12) target bundleno = 845 (0x34d), region = 44 }
  0xa6   : > { %v301_v8 = vpop.f32.mrf.mxu0 }
  0xa7   : > { %v683_v9 = vpack.c.bf16 %v301_v8, %v299_v7 }
  0xa9   : > { %684 = vst [vmem:[#allocation2] sm:$0xff] %v683_v9  }
  0xaa   : > { %v333_v10 = vld [vmem:[%s1039_s4] sm:$0xff]  ;;  %v323_v11 = vlaneseq  ;;  %v326_v14 = vstv %s954_s11  ;;  %vm343_vm3 = vcmask 1043456   ;;  %vm339_vm5 = vcmask 64512   ;;  %v416_v40 = vld [vmem:[#allocation4] sm:$0xff]  ;;  %v417_v45 = vld [vmem:[#allocation4 + $0x8] sm:$0xff] }
  0xab   : > { %v335_v12 = vunpack.c.l.b16 %v333_v10  ;;  %v336_v13 = vunpack.c.h.b16 %v333_v10  ;;  %v328_v16 = vld [vmem:[%s269_s28] sm:$0xff]  ;;  %v860_v39 = vmov 0   ;;  %v449_v63 = vld [vmem:[#allocation5] sm:$0xff]  ;;  %v464_v8 = vld [vmem:[#allocation6] sm:$0xff] }
  0xac   : > { %v324_v15 = vshrl.u32 %v323_v11, 7  ;;  %v408_v32 = vand.u32 127, %v323_v11  ;;  %747 = vset.pattern.permute.xlu1 %v860_v39  ;;  %748 = vset.pattern.permute.xlu2 %v860_v39  ;;  %v450_v3 = vld [vmem:[#allocation5 + $0x8] sm:$0xff] }
  0xad   : > { %v337_v17 = vpack.c.b16 %v335_v12, %v335_v12  ;;  %v338_v18 = vpack.c.b16 %v336_v13, %v336_v13  ;;  %749 = vset.pattern.permute.xlu0 %v860_v39  ;;  %v465_v12 = vld [vmem:[#allocation6 + $0x8] sm:$0xff] }
  0xae   : > { %vm327_vm4 = vcmp.lt.s32.totalorder %v324_v15, %v326_v14  ;;  %vm411_vm6 = vcmp.lt.s32.totalorder %v408_v32, %v326_v14 }
  0xaf   : > { %v345_v19 = vsel %vm343_vm3, %v337_v17, 0  ;;  %v348_v20 = vsel %vm343_vm3, %v338_v18, 0  ;;  %v331_v21 = vsel %vm327_vm4, %v328_v16, 0.0 }
  0xb0   : > { %357 = vmatpush.bf16.msra.mxu0 %v345_v19  ;;  %370 = vmatpush.bf16.msra.mxu1 %v348_v20  ;;  %v332_v22 = vpack.c.bf16 %v331_v21, %v331_v21  ;;  %v678_v28 = vld [vmem:[#allocation2] sm:$0xff] }
  0xb3   : > { %665 = vmatmul.msk.bf16.vlgmr.msra.gmra.mxu0 %vm339_vm5, %v332_v22  ;;  %666 = vmatmul.msk.bf16.vlgmr.msra.gmra.mxu1 %vm339_vm5, %v332_v22 }
 0x130   : > { %v359_v23 = vpop.f32.mrf.mxu0  ;;  %v372_v24 = vpop.f32.mrf.mxu1 }
 0x131   : > { %v376_v25 = vpack.c.bf16 %v372_v24, %v359_v23 }
 0x133   : > { %400 = vmatpush.bf16.xpose.msra.mxu2 %v376_v25  ;;  %v480_v26 = vunpack.c.h.b16 %v376_v25 }
 0x135   : > { %v481_v27 = vpack.c.b16 %v480_v26, %v480_v26 }
 0x137   : > { %v487_v29 = vsel %vm343_vm3, %v481_v27, 0 }
 0x138   : > { %v361_v30 = vpop.f32.mrf.mxu0  ;;  %v374_v31 = vpop.f32.mrf.mxu1  ;;  %496 = vmatpush.bf16.msra.mxu3 %v487_v29 }
 0x13a   : > { %401 = vmatmul.bf16.vlgmr.msra.gmra.mxu2 %v678_v28 }
 0x1bd   : > { %v402_v33 = vpop.f32.mrf.mxu2 }
 0x1be   : > { %v414_v34 = vsel %vm411_vm6, %v402_v33, -1e+30 }
 0x1bf   : > { %v419_v35 = vsel %vm339_vm5, %v414_v34, -inf }
 0x1c0   : > { %420 = vmax.xlane.f32.xlu0 %v419_v35 }
 0x1c5   : > { %v404_v36 = vpop.f32.mrf.mxu2 }
 0x1c6   : > { %v415_v37 = vsel %vm411_vm6, %v404_v36, -1e+30 }
 0x1c7   : > { %v422_v38 = vsel %vm339_vm5, %v415_v37, -inf }
 0x1c8   : > { %423 = vmax.xlane.f32.xlu0 %v422_v38 }
 0x233   : > { %v421_v41 = vpop.xlane.xlu0 %420 }
 0x234   : > { %v425_v42 = vmax.f32 %v416_v40, %v421_v41 }
 0x236   : > { %v443_v43 = vsub.f32 %v416_v40, %v425_v42  ;;  %507 = vst.msk [vmem:[#allocation4] sm:$0xff] %vm308_vm2, %v425_v42  ;;  %429 = vperm.xlu1 %747, %v425_v42  }
 0x238   : > { %v445_v44 = vmul.f32 1.442695, %v443_v43 }
 0x23a   : > { %750 = vpow2.f32 %v445_v44 }
 0x23b   : > { %v424_v46 = vpop.xlane.xlu0 %423 }
 0x23c   : > { %v426_v47 = vmax.f32 %v417_v45, %v424_v46 }
 0x23e   : > { %v444_v48 = vsub.f32 %v417_v45, %v426_v47  ;;  %508 = vst.msk [vmem:[#allocation4 + $0x8] sm:$0xff] %vm308_vm2, %v426_v47  ;;  %434 = vperm.xlu1 %747, %v426_v47  }
 0x240   : > { %v751_v49 = vpop.eup %750  ;;  %v447_v50 = vmul.f32 1.442695, %v444_v48 }
 0x241   : > { %468 = vperm.xlu2 %748, %v751_v49   ;;  %v451_v0 = vmul.f32 %v751_v49, %v449_v63 }
 0x242   : > { %752 = vpow2.f32 %v447_v50 }
 0x248   : > { %v753_v51 = vpop.eup %752 }
 0x249   : > { %473 = vperm.xlu2 %748, %v753_v51   ;;  %v452_v4 = vmul.f32 %v753_v51, %v450_v3 }
 0x29b   : > { %v469_v7 = vpop.permute.xlu2 %468 }
 0x29c   : > { %v476_v9 = vmul.f32 %v469_v7, %v464_v8 }
 0x2a3   : > { %v474_v13 = vpop.permute.xlu2 %473 }
 0x2a4   : > { %v477_v14 = vmul.f32 %v474_v13, %v465_v12 }
 0x2a8   : > { %v430_v52 = vpop.permute.xlu1 %429 }
 0x2a9   : > { %v437_v53 = vsub.f32 %v414_v34, %v430_v52 }
 0x2ab   : > { %v439_v54 = vmul.f32 1.442695, %v437_v53 }
 0x2ad   : > { %754 = vpow2.f32 %v439_v54 }
 0x2b0   : > { %v435_v55 = vpop.permute.xlu1 %434 }
 0x2b1   : > { %v438_v56 = vsub.f32 %v415_v37, %v435_v55 }
 0x2b3   : > { %v755_v57 = vpop.eup %754  ;;  %v441_v58 = vmul.f32 1.442695, %v438_v56 }
 0x2b4   : > { %v453_v59 = vsel %vm339_vm5, %v755_v57, 0.0 }
 0x2b5   : > { %756 = vpow2.f32 %v441_v58  ;;  %454 = vadd.xlane.f32.xlu0 %v453_v59 }
 0x2bb   : > { %v757_v60 = vpop.eup %756 }
 0x2bc   : > { %v456_v61 = vsel %vm339_vm5, %v757_v60, 0.0  ;;  %v478_v62 = vpack.c.bf16 %v757_v60, %v755_v57 }
 0x2bd   : > { %457 = vadd.xlane.f32.xlu1 %v456_v61 }
 0x2be   : > { %671 = vmatmul.msk.bf16.vlgmr.msra.gmra.mxu3 %vm339_vm5, %v478_v62 }
 0x328   : > { %v455_v1 = vpop.xlane.xlu0 %454 }
 0x329   : > { %v459_v2 = vadd.f32 %v455_v1, %v451_v0 }
 0x32b   : > { %462 = vst.msk [vmem:[#allocation5] sm:$0xff] %vm308_vm2, %v459_v2 }
 0x330   : > { %v458_v5 = vpop.xlane.xlu1 %457 }
 0x331   : > { %v460_v6 = vadd.f32 %v458_v5, %v452_v4 }
 0x333   : > { %463 = vst.msk [vmem:[#allocation5 + $0x8] sm:$0xff] %vm308_vm2, %v460_v6 }
 0x341   : > { %v498_v10 = vpop.f32.mrf.mxu3 }
 0x342   : > { %v503_v11 = vadd.f32 %v498_v10, %v476_v9 }
 0x344   : > { %505 = vst [vmem:[#allocation6] sm:$0xff] %v503_v11 }
 0x349   : > { %v500_v15 = vpop.f32.mrf.mxu3 }
 0x34a   : > { %v504_v16 = vadd.f32 %v500_v15, %v477_v14 }
 0x34c   : > { %506 = vst [vmem:[#allocation6 + $0x8] sm:$0xff] %v504_v16 }
 0x34d PF: > { %v512_v17 = vld [vmem:[#allocation5] sm:$0xff]  ;;  %v861_v18 = vmov 0   ;;  %v513_v20 = vld [vmem:[#allocation5 + $0x8] sm:$0xff]  ;;  %v518_v24 = vld [vmem:[#allocation6] sm:$0xff]  ;;  %s679_s11 = sshll.u32 %s847_s25, 4  ;;  %s549_s16 = sshll.u32 %s973_s30, 4  ;;  %s550_s16 = int_to_ptr.vmem [resolvable:$true] %s549_s16 }
 0x34e   : > { %758 = vset.pattern.permute.xlu0 %v861_v18  ;;  %v514_v19 = vmax.f32 %v512_v17, 1e-30  ;;  %v515_v21 = vmax.f32 %v513_v20, 1e-30  ;;  %s548_s15 = scalar_lea.hbm %s1040_s5, %s679_s11  ;;  %s535_s18 = scalar_lea.sflag [#allocation10], %s250_s10 }
 0x34f   : > { %s551_s17 = sshll.u32 %s548_s15, 4  ;;  %s795_s0 = scalar_lea.hbm %s1040_s5, 32  ;;  %s552_s17 = int_to_ptr.hbm [resolvable:$true] %s551_s17 }
 0x350   : > { %759 = vrcp.f32 %v514_v19  ;;  %s789_s19 = sshra.s32 %s552_s17, 4  ;;  %s790_s19 = int_to_ptr.hbm [resolvable:$true] %s789_s19 }
 0x351   : > { %761 = vrcp.f32 %v515_v21  ;;  %s791_s25 = scalar_lea.hbm %s790_s19, 16  ;;  %p796_p2 = scmp.lt.s32.totalorder %s790_s19, %s1040_s5 }
 0x352   : > { %p792_p13 = scmp.ne.s32.totalorder %s790_s19, %s791_s25  ;;  %p797_p3 = scmp.lt.s32.totalorder %s795_s0, %s791_s25 }
 0x353   : > { %v519_v27 = vld [vmem:[#allocation6 + $0x8] sm:$0xff] }
 0x354   : > { %p793_p0 = pnand %p792_p13, %p937_p4  ;;  %p798_p5 = por %p797_p3, %p796_p2 }
 0x356   : > { %v760_v22 = vpop.eup %759  ;;  %p794_p1 = pneg %p793_p0 }
 0x357   : > { %522 = vperm.xlu0 %758, %v760_v22   ;;  %v762_v23 = vpop.eup %761 }
 0x358   : > { %p799_p6 = pnand %p798_p5, %p794_p1 }
 0x35f   : > { %527 = vperm.xlu0 %758, %v762_v23  }
 0x3c9   : > { %v523_v25 = vpop.permute.xlu0 %522 }
 0x3ca   : > { %v530_v26 = vmul.f32 %v523_v25, %v518_v24 }
 0x3cc   : > { %532 = vst [vmem:[%s973_s30] sm:$0xff] %v530_v26 }
 0x3d1   : > { %v528_v28 = vpop.permute.xlu0 %527 }
 0x3d2   : > { %v531_v29 = vmul.f32 %v528_v28, %v519_v27 }
 0x3d4   : > { %533 = vst [vmem:[%s973_s30 + $0x8] sm:$0xff] %v531_v29 }
 0x3d5   : > { %802 = shalt.err (!%p799_p6)
}
 0x3d6   : > { %s862_s10 = smov 128   ;;  %s863_s30 = smov 8  }
 0x3d7   : > { %685 = dma.vmem_to_hbm [thread:$0]  (%p937_p4), %s550_s16, 256, %s552_s17, %s535_s18, %s862_s10, %s862_s10, %s863_s30  }
 0x3d8 PF: > { %p691_p7 = scmp.ge.s32.totalorder %s855_s27, 2  ;;  %s566_s12 = sand.u32 1, %s835_s22  }
 0x3d9   : > { %s567_s11 = scalar_lea.sflag [#allocation10], %s566_s12 }
 0x3da   : > { %p688_p9 = pnand %p691_p7, %p944_p8 }
 0x3dc   : > { %p689_p10 = pneg %p688_p9 }
 0x3de   : > { %830 = dma.done.wait (%p689_p10), %s567_s11, 256  }
 0x3df   : > { %832 = vsyncadd (%p689_p10), %s567_s11, 4294967040  ;;  %s26_s27 = sadd.s32 1, %s855_s27   ;;  %s1043_s22 = smov %s839_s23 }
 0x3e0   : > { %p23_p11 = scmp.ge.s32.totalorder %s26_s27, 4   ;;  %s1044_s23 = smov %s843_s24 }
 0x3e1   : > { %s1045_s24 = smov %s950_s9  ;;  %s1046_s25 = smov %s851_s26 }
 0x3e2   : > { %s1047_s26 = smov %s1049_s29  ;;  %25 = sbr.rel (!%p23_p11) target bundleno = 10 (0xa), region = 92 }
 0x3e7   :  { %573 = vsyncpa [#allocation10], 1 }
 0x3e8   :  { %575 = vsyncpa [#allocation10 + $0x1], 1 }

</bundles_post_ra>
